<compile_context>
chip_gen: v7x
topology: tpu7x:2x2x1
jax: 0.10.0
libtpu: 0.0.40
codegen_flags: <defaults>
</compile_context>

<pallas_src>
import functools

import jax
import jax.numpy as jnp
from jax.experimental import pallas as pl
from jax.experimental.pallas import tpu as pltpu


def _tile(dim, pref, align):
    """Largest tile <= pref that divides dim (full extent if dim already fits)."""
    if dim <= pref:
        return dim
    t = (pref // align) * align
    while t > align and dim % t != 0:
        t -= align
    if t <= 0 or dim % t != 0:
        raise ValueError(f"cannot tile dim={dim} (align={align}, pref={pref})")
    return t


# ---------------------------------------------------------------------------
# Tiled linear kernel:  Y = X @ W + b
#   X (M, K), W (K, N), b (1, N)  ->  Y (M, N)
# ---------------------------------------------------------------------------
def _linear_kernel(x_ref, w_ref, b_ref, o_ref, acc_ref):
    @pl.when(pl.program_id(2) == 0)
    def _():
        acc_ref[...] = jnp.zeros_like(acc_ref)

    acc_ref[...] += jnp.dot(x_ref[...], w_ref[...],
                            preferred_element_type=jnp.float32)

    @pl.when(pl.program_id(2) == pl.num_programs(2) - 1)
    def _():
        o_ref[...] = (acc_ref[...] + b_ref[...].astype(jnp.float32)).astype(o_ref.dtype)


def linear(x, w, b, *, tm_pref=256, tn_pref=256, tk_pref=512):
    M, K = x.shape
    Kw, N = w.shape
    assert K == Kw, (x.shape, w.shape)
    tm = _tile(M, tm_pref, 8)
    tn = _tile(N, tn_pref, 128)
    tk = _tile(K, tk_pref, 128)
    grid = (M // tm, N // tn, K // tk)
    return pl.pallas_call(
        _linear_kernel,
        out_shape=jax.ShapeDtypeStruct((M, N), x.dtype),
        grid_spec=pltpu.PrefetchScalarGridSpec(
            num_scalar_prefetch=0,
            grid=grid,
            in_specs=[
                pl.BlockSpec((tm, tk), lambda i, j, k: (i, k)),
                pl.BlockSpec((tk, tn), lambda i, j, k: (k, j)),
                pl.BlockSpec((1, tn), lambda i, j, k: (0, j)),
            ],
            out_specs=pl.BlockSpec((tm, tn), lambda i, j, k: (i, j)),
            scratch_shapes=[pltpu.VMEM((tm, tn), jnp.float32)],
        ),
        compiler_params=pltpu.CompilerParams(
            dimension_semantics=("parallel", "parallel", "arbitrary")),
    )(x, w, b.reshape(1, N))


# ---------------------------------------------------------------------------
# Flash-style attention core, batched over (B * num_heads).
#   q (BH, QN, Dh), k (BH, N, Dh), v (BH, N, Dh)  ->  o (BH, QN, Dh)
# ---------------------------------------------------------------------------
def _attn_kernel(q_ref, k_ref, v_ref, o_ref, m_sc, l_sc, acc_sc, *, scale):
    kv_i = pl.program_id(2)

    @pl.when(kv_i == 0)
    def _():
        m_sc[...] = jnp.full_like(m_sc, -jnp.inf)
        l_sc[...] = jnp.zeros_like(l_sc)
        acc_sc[...] = jnp.zeros_like(acc_sc)

    q = q_ref[0].astype(jnp.float32)          # (tq, Dh)
    k = k_ref[0].astype(jnp.float32)          # (tkv, Dh)
    v = v_ref[0].astype(jnp.float32)          # (tkv, Dh)

    # scores = q @ k^T * scale   -> (tq, tkv)
    s = jax.lax.dot_general(q, k, (((1,), (1,)), ((), ())),
                            preferred_element_type=jnp.float32) * scale

    m_prev = m_sc[...]
    m_new = jnp.maximum(m_prev, jnp.max(s, axis=-1, keepdims=True))
    alpha = jnp.exp(m_prev - m_new)
    p = jnp.exp(s - m_new)
    l_sc[...] = alpha * l_sc[...] + jnp.sum(p, axis=-1, keepdims=True)
    acc_sc[...] = alpha * acc_sc[...] + jnp.dot(p, v,
                                                preferred_element_type=jnp.float32)
    m_sc[...] = m_new

    @pl.when(kv_i == pl.num_programs(2) - 1)
    def _():
        o_ref[0] = (acc_sc[...] / l_sc[...]).astype(o_ref.dtype)


def attention_core(qh, kh, vh, *, scale, tq_pref=256, tkv_pref=512):
    BH, QN, Dh = qh.shape
    _, N, _ = kh.shape
    tq = _tile(QN, tq_pref, 8)
    tkv = _tile(N, tkv_pref, 8)
    grid = (BH, QN // tq, N // tkv)
    kern = functools.partial(_attn_kernel, scale=float(scale))
    return pl.pallas_call(
        kern,
        out_shape=jax.ShapeDtypeStruct((BH, QN, Dh), qh.dtype),
        grid_spec=pltpu.PrefetchScalarGridSpec(
            num_scalar_prefetch=0,
            grid=grid,
            in_specs=[
                pl.BlockSpec((1, tq, Dh), lambda b, qi, ki: (b, qi, 0)),
                pl.BlockSpec((1, tkv, Dh), lambda b, qi, ki: (b, ki, 0)),
                pl.BlockSpec((1, tkv, Dh), lambda b, qi, ki: (b, ki, 0)),
            ],
            out_specs=pl.BlockSpec((1, tq, Dh), lambda b, qi, ki: (b, qi, 0)),
            scratch_shapes=[
                pltpu.VMEM((tq, 1), jnp.float32),    # running max m
                pltpu.VMEM((tq, 1), jnp.float32),    # running denom l
                pltpu.VMEM((tq, Dh), jnp.float32),   # running numerator acc
            ],
        ),
        compiler_params=pltpu.CompilerParams(
            dimension_semantics=("parallel", "parallel", "arbitrary")),
    )(qh, kh, vh)


# ---------------------------------------------------------------------------
# Full Attention.forward
# ---------------------------------------------------------------------------
def attention_forward(q, kv, wq, bq, wkv, bkv, wproj, bproj, *,
                      num_heads, qk_scale=None):
    B, QN, C = q.shape
    Bk, N, Ck = kv.shape
    assert B == Bk and C == Ck
    Dh = C // num_heads
    scale = qk_scale if qk_scale is not None else Dh ** (-0.5)

    # projections (Pallas tiled matmul)
    q_p = linear(q.reshape(B * QN, C), wq, bq)         # (B*QN, C)
    kv_p = linear(kv.reshape(B * N, C), wkv, bkv)      # (B*N, 2C)

    # split heads / k-v (layout plumbing kept in JAX)
    qh = q_p.reshape(B, QN, num_heads, Dh).transpose(0, 2, 1, 3) \
            .reshape(B * num_heads, QN, Dh)
    kvh = kv_p.reshape(B, N, 2, num_heads, Dh)
    kh = kvh[:, :, 0].transpose(0, 2, 1, 3).reshape(B * num_heads, N, Dh)
    vh = kvh[:, :, 1].transpose(0, 2, 1, 3).reshape(B * num_heads, N, Dh)

    # softmax attention (Pallas flash kernel); attn_drop p=0 -> identity
    oh = attention_core(qh, kh, vh, scale=scale)       # (B*H, QN, Dh)

    # merge heads + output projection; proj_drop p=0 -> identity
    o = oh.reshape(B, num_heads, QN, Dh).transpose(0, 2, 1, 3).reshape(B * QN, C)
    out = linear(o, wproj, bproj)
    return out.reshape(B, QN, C)


# ---------------------------------------------------------------------------
# pure-JAX reference for the demo correctness check
# ---------------------------------------------------------------------------
def _reference(q, kv, wq, bq, wkv, bkv, wp, bp, num_heads, scale):
    B, QN, C = q.shape
    _, N, _ = kv.shape
    Dh = C // num_heads
    qp = q.reshape(B * QN, C) @ wq + bq
    kvp = kv.reshape(B * N, C) @ wkv + bkv
    qh = qp.reshape(B, QN, num_heads, Dh).transpose(0, 2, 1, 3)
    kvh = kvp.reshape(B, N, 2, num_heads, Dh)
    kh = kvh[:, :, 0].transpose(0, 2, 1, 3)
    vh = kvh[:, :, 1].transpose(0, 2, 1, 3)
    s = jnp.einsum('bhqd,bhkd->bhqk', qh, kh) * scale
    p = jax.nn.softmax(s, axis=-1)
    o = jnp.einsum('bhqk,bhkd->bhqd', p, vh).transpose(0, 2, 1, 3).reshape(B * QN, C)
    return (o @ wp + bp).reshape(B, QN, C)


if __name__ == "__main__":
    key = jax.random.PRNGKey(0)
    B, QN, N, C, H = 2, 8, 16, 64, 8          # dim=64, num_heads=8 -> head_dim=8
    qkv_bias = False
    k1, k2, k3, k4, k5, k6 = jax.random.split(key, 6)

    q = jax.random.normal(k1, (B, QN, C), jnp.float32)
    kv = jax.random.normal(k2, (B, N, C), jnp.float32)

    wq = jax.random.normal(k3, (C, C), jnp.float32) * 0.05
    wkv = jax.random.normal(k4, (C, 2 * C), jnp.float32) * 0.05
    wproj = jax.random.normal(k5, (C, C), jnp.float32) * 0.05
    bq = jnp.zeros((C,), jnp.float32)          # qkv_bias=False
    bkv = jnp.zeros((2 * C,), jnp.float32)     # qkv_bias=False
    bproj = jax.random.normal(k6, (C,), jnp.float32) * 0.05

    out = attention_forward(q, kv, wq, bq, wkv, bkv, wproj, bproj, num_heads=H)
    out = jax.block_until_ready(out)

    ref = _reference(q, kv, wq, bq, wkv, bkv, wproj, bproj, H, (C // H) ** (-0.5))
    if not jnp.allclose(out, ref, atol=1e-4, rtol=1e-4):
        raise AssertionError(
            f"Pallas attention mismatch: max |diff| = {jnp.max(jnp.abs(out - ref))}")

    print("KERNEL_OK")
</pallas_src>

<mosaic_0001>
module attributes {stable_mosaic.version = 11 : i64} {
  func.func @_linear_kernel(%arg0: i32, %arg1: i32, %arg2: i32, %arg3: memref<16x64xf32, #tpu.memory_space<vmem>>, %arg4: memref<64x64xf32, #tpu.memory_space<vmem>>, %arg5: memref<1x64xf32, #tpu.memory_space<vmem>>, %arg6: memref<16x64xf32, #tpu.memory_space<vmem>>, %arg7: memref<16x64xf32, #tpu.memory_space<vmem>>) attributes {dimension_semantics = [#tpu.dimension_semantics<parallel>, #tpu.dimension_semantics<parallel>, #tpu.dimension_semantics<arbitrary>], iteration_bounds = array<i64: 1, 1, 1>, scalar_prefetch = 0 : i64, scratch_operands = 1 : i64, tpu.core_type = #tpu.core_type<tc>, window_params = [{transform_indices = @transform_0, window_bounds = array<i64: 16, 64>}, {transform_indices = @transform_1, window_bounds = array<i64: 64, 64>}, {transform_indices = @transform_2, window_bounds = array<i64: 1, 64>}, {transform_indices = @transform_3, window_bounds = array<i64: 16, 64>}]} {
    %c0_i32 = arith.constant 0 : i32
    %0 = arith.cmpi eq, %arg2, %c0_i32 : i32
    %1 = arith.extui %0 : i1 to i32
    %c0_i32_0 = arith.constant 0 : i32
    %2 = arith.cmpi ne, %1, %c0_i32_0 : i32
    scf.if %2 {
      %cst_10 = arith.constant 0.000000e+00 : f32
      %12 = vector.broadcast %cst_10 : f32 to vector<16x64xf32>
      %c0_11 = arith.constant 0 : index
      %c0_12 = arith.constant 0 : index
      %13 = vector.load %arg7[%c0_11, %c0_12] : memref<16x64xf32, #tpu.memory_space<vmem>>, vector<16x64xf32>
      tpu.vector_store %arg7[%c0_11, %c0_12], %12 {strides = array<i32>} : memref<16x64xf32, #tpu.memory_space<vmem>>, vector<16x64xf32>,
    } else {
    }
    %c0 = arith.constant 0 : index
    %c0_1 = arith.constant 0 : index
    %3 = vector.load %arg7[%c0, %c0_1] : memref<16x64xf32, #tpu.memory_space<vmem>>, vector<16x64xf32>
    %c0_2 = arith.constant 0 : index
    %c0_3 = arith.constant 0 : index
    %4 = vector.load %arg3[%c0_2, %c0_3] : memref<16x64xf32, #tpu.memory_space<vmem>>, vector<16x64xf32>
    %c0_4 = arith.constant 0 : index
    %c0_5 = arith.constant 0 : index
    %5 = vector.load %arg4[%c0_4, %c0_5] : memref<64x64xf32, #tpu.memory_space<vmem>>, vector<64x64xf32>
    %cst = arith.constant dense<0.000000e+00> : vector<16x64xf32>
    %6 = tpu.matmul %4, %5, %cst {dimension_numbers = #tpu.dot_dimension_numbers<[1], [0], [0], [1], [0, 0, 1, 1], [], []>} : vector<16x64xf32>, vector<64x64xf32>, vector<16x64xf32> -> vector<16x64xf32>
    %7 = arith.addf %3, %6 : vector<16x64xf32>
    %c0_6 = arith.constant 0 : index
    %c0_7 = arith.constant 0 : index
    %8 = vector.load %arg7[%c0_6, %c0_7] : memref<16x64xf32, #tpu.memory_space<vmem>>, vector<16x64xf32>
    tpu.vector_store %arg7[%c0_6, %c0_7], %7 {strides = array<i32>} : memref<16x64xf32, #tpu.memory_space<vmem>>, vector<16x64xf32>,
    %c0_i32_8 = arith.constant 0 : i32
    %9 = arith.cmpi eq, %arg2, %c0_i32_8 : i32
    %10 = arith.extui %9 : i1 to i32
    %c0_i32_9 = arith.constant 0 : i32
    %11 = arith.cmpi ne, %10, %c0_i32_9 : i32
    scf.if %11 {
      %c0_10 = arith.constant 0 : index
      %c0_11 = arith.constant 0 : index
      %12 = vector.load %arg7[%c0_10, %c0_11] : memref<16x64xf32, #tpu.memory_space<vmem>>, vector<16x64xf32>
      %c0_12 = arith.constant 0 : index
      %c0_13 = arith.constant 0 : index
      %13 = vector.load %arg5[%c0_12, %c0_13] : memref<1x64xf32, #tpu.memory_space<vmem>>, vector<1x64xf32>
      %14 = vector.broadcast %13 : vector<1x64xf32> to vector<16x64xf32>
      %15 = arith.addf %12, %14 : vector<16x64xf32>
      %c0_14 = arith.constant 0 : index
      %c0_15 = arith.constant 0 : index
      %16 = vector.load %arg6[%c0_14, %c0_15] : memref<16x64xf32, #tpu.memory_space<vmem>>, vector<16x64xf32>
      tpu.vector_store %arg6[%c0_14, %c0_15], %15 {strides = array<i32>} : memref<16x64xf32, #tpu.memory_space<vmem>>, vector<16x64xf32>,
    } else {
    }
    return
  }
  func.func @transform_0(%arg0: i32, %arg1: i32, %arg2: i32) -> (i32, i32) {
    %c0_i32 = arith.constant 0 : i32
    return %arg0, %arg2 : i32, i32
  }
  func.func @transform_1(%arg0: i32, %arg1: i32, %arg2: i32) -> (i32, i32) {
    %c0_i32 = arith.constant 0 : i32
    return %arg2, %arg1 : i32, i32
  }
  func.func @transform_2(%arg0: i32, %arg1: i32, %arg2: i32) -> (i32, i32) {
    %c0_i32 = arith.constant 0 : i32
    %c0_i32_0 = arith.constant 0 : i32
    return %c0_i32, %arg1 : i32, i32
  }
  func.func @transform_3(%arg0: i32, %arg1: i32, %arg2: i32) -> (i32, i32) {
    %c0_i32 = arith.constant 0 : i32
    return %arg0, %arg1 : i32, i32
  }
}

</mosaic_0001>

<bundles_post_ra>
// kernel: tpu_custom_call.1
= control target key start
LH: loop header
LB: loop body
LE: loop exit
PB: predicated region body
PF: predicated region fallthrough
CT: control target
= control target key end

     0   :  { %8 = vsyncpa [#allocation4], 0  ;;  %s390_s0 = inlined_call_operand.hbm [shape: f32[16,64], index: 0, kind: input, shape index: {}]   ;;  %s391_s1 = inlined_call_operand.hbm [shape: f32[64,64], index: 1, kind: input, shape index: {}]   ;;  %s392_s2 = inlined_call_operand.vmem [shape: f32[1,64], index: 2, kind: input, shape index: {}]   ;;  %s393_s3 = inlined_call_operand.hbm [shape: f32[16,64], index: 3, kind: output, shape index: {}]  }
   0x1   :  { %9 = vsyncpa [#allocation7], 0 }
   0x2   :  { %10 = vsyncpa [#allocation5], 0  ;;  %s308_s12 = smov [#allocation3]   ;;  %s236_s16 = scalar_lea.hbm %s390_s0, 256 }
   0x3   :  { %s16_s13 = sshll.u32 %s308_s12, 4  ;;  %p237_p0 = scmp.ne.s32.totalorder %s390_s0, %s236_s16  ;;  %s17_s13 = int_to_ptr.vmem [resolvable:$true] %s16_s13 }
   0x4   :  { %p240_p1 = scmp.lt.u32.totalorder %s236_s16, %s390_s0 }
   0x6   :  { %p242_p2 = pnand %p240_p1, %p237_p0 }
   0x8   :  { %245 = shalt.err (!%p242_p2)
}
   0x9   :  { %s246_s21 = scalar_lea.vmem %s17_s13, 256  ;;  %p251_p4 = scmp.lt.s32.totalorder %s17_s13, %s17_s13 }
   0xa   :  { %p247_p3 = scmp.ne.s32.totalorder %s17_s13, %s246_s21  ;;  %p252_p5 = scmp.lt.s32.totalorder %s246_s21, %s246_s21 }
   0xc   :  { %p253_p6 = por %p252_p5, %p251_p4 }
   0xe   :  { %p254_p7 = pnand %p253_p6, %p247_p3 }
  0x10   :  { %257 = shalt.err (!%p254_p7)
}
  0x11   :  { %s309_s22 = smov 128   ;;  %s310_s23 = smov 8  }
  0x12   :  { %22 = dma.hbm_to_vmem [thread:$0]  %s390_s0, 256, %s17_s13, [#allocation4], %s309_s22, %s309_s22, %s310_s23  }
  0x13   :  { %s311_s26 = smov [#allocation6]   ;;  %s258_s30 = scalar_lea.hbm %s391_s1, 1024 }
  0x14   :  { %s28_s27 = sshll.u32 %s311_s26, 4  ;;  %p259_p8 = scmp.ne.s32.totalorder %s391_s1, %s258_s30  ;;  %s29_s27 = int_to_ptr.vmem [resolvable:$true] %s28_s27 }
  0x15   :  { %p262_p9 = scmp.lt.u32.totalorder %s258_s30, %s391_s1 }
  0x17   :  { %p264_p10 = pnand %p262_p9, %p259_p8 }
  0x19   :  { %267 = shalt.err (!%p264_p10)
}
  0x1a   :  { %s268_s8 = scalar_lea.vmem %s29_s27, 1024  ;;  %p273_p12 = scmp.lt.s32.totalorder %s29_s27, %s29_s27 }
  0x1b   :  { %p269_p11 = scmp.ne.s32.totalorder %s29_s27, %s268_s8  ;;  %p274_p13 = scmp.lt.s32.totalorder %s268_s8, %s268_s8 }
  0x1d   :  { %p275_p0 = por %p274_p13, %p273_p12 }
  0x1f   :  { %p276_p1 = pnand %p275_p0, %p269_p11 }
  0x21   :  { %279 = shalt.err (!%p276_p1)
}
  0x22   :  { %34 = dma.hbm_to_vmem [thread:$0]  %s391_s1, 1024, %s29_s27, [#allocation7], %s309_s22, %s309_s22, %s310_s23  }
  0x23   :  { %302 = dma.done.wait [#allocation4], 256  }
  0x24   :  { %303 = vsyncadd [#allocation4], 4294967040 }
  0x25   :  { %304 = dma.done.wait [#allocation7], 1024  }
  0x26   :  { %305 = vsyncadd [#allocation7], 4294966272  ;;  %vm47_vm0 = vcmask 523264   ;;  %v312_v0 = vmov 0.0   ;;  %v54_v1 = vld [vmem:[#allocation6] sm:$0xff]  ;;  %v55_v2 = vld [vmem:[#allocation6 + $0x8] sm:$0xff] }
  0x27   :  { %49 = vst.msk [vmem:[#allocation2 + $0x8] sm:$0xff] %vm47_vm0, %v312_v0  ;;  %48 = vst.msk [vmem:[#allocation2] sm:$0xff] %vm47_vm0, %v312_v0  ;;  %v56_v3 = vld [vmem:[#allocation6 + $0x10] sm:$0xff]  ;;  %v214_v4 = vpack.c.bf16 %v55_v2, %v54_v1  ;;  %v57_v5 = vld [vmem:[#allocation6 + $0x18] sm:$0xff]  ;;  %s313_s11 = smov [#allocation8]  }
  0x28   :  { %v218_v6 = vpack.c.bf16 %v57_v5, %v56_v3  ;;  %v58_v7 = vld [vmem:[#allocation6 + $0x20] sm:$0xff]  ;;  %v59_v8 = vld [vmem:[#allocation6 + $0x28] sm:$0xff]  ;;  %v52_v9 = vld [vmem:[#allocation3] sm:$0xff]  ;;  %s169_s12 = sshll.u32 %s313_s11, 4  ;;  %s170_s12 = int_to_ptr.vmem [resolvable:$true] %s169_s12 }
  0x29   :  { %215 = vmatprep.subr.bf16.mxu0 %v214_v4  ;;  %211 = vmatprep.mubr.msk.f32.mxu0 %vm47_vm0, %v52_v9  ;;  %v222_v10 = vpack.c.bf16 %v59_v8, %v58_v7  ;;  %v60_v11 = vld [vmem:[#allocation6 + $0x30] sm:$0xff]  ;;  %v61_v12 = vld [vmem:[#allocation6 + $0x38] sm:$0xff]  ;;  %v184_v21 = vld [vmem:[%s392_s2] ss:$0 sm:$0xff]  ;;  %s280_s13 = scalar_lea.vmem %s170_s12, 256  ;;  %p285_p3 = scmp.lt.s32.totalorder %s170_s12, %s170_s12 }
  0x2a   :  { %217 = vmatpush3.bf16.msra.mxu0 %v214_v4  ;;  %v226_v13 = vpack.c.bf16 %v61_v12, %v60_v11  ;;  %v53_v14 = vld [vmem:[#allocation3 + $0x8] sm:$0xff]  ;;  %p281_p2 = scmp.ne.s32.totalorder %s170_s12, %s280_s13  ;;  %p286_p4 = scmp.lt.s32.totalorder %s280_s13, %s280_s13 }
  0x2b   :  { %219 = vmatprep.subr.bf16.mxu0 %v218_v6 }
  0x2c   :  { %p287_p5 = por %p286_p4, %p285_p3 }
  0x2e   :  { %221 = vmatpush3.bf16.msra.mxu0 %v218_v6  ;;  %v51_v15 = vld [vmem:[#allocation2 + $0x8] sm:$0xff]  ;;  %v50_v16 = vld [vmem:[#allocation2] sm:$0xff]  ;;  %p288_p6 = pnand %p287_p5, %p281_p2 }
  0x2f   :  { %223 = vmatprep.subr.bf16.mxu0 %v222_v10 }
  0x32   :  { %225 = vmatpush3.bf16.msra.mxu0 %v222_v10 }
  0x33   :  { %227 = vmatprep.subr.bf16.mxu0 %v226_v13 }
  0x36   :  { %229 = vmatpush3.bf16.msra.mxu0 %v226_v13 }
  0x39   :  { %212 = vmatmul.mubr.msk.f32.vlgmr.msra.gmra.mrb[0].mxu0 %vm47_vm0, %v53_v14 }
 0x10c   :  { %v213_v17 = vpop.f32.mrb[0].mxu0 }
 0x10d   :  { %v145_v18 = vadd.f32 %v213_v17, %v51_v15  ;;  %v135_v19 = vpop.f32.mrb[1].mxu0 }
 0x10e   :  { %v144_v20 = vadd.f32 %v135_v19, %v50_v16 }
 0x10f   :  { %147 = vst.msk [vmem:[#allocation2 + $0x8] sm:$0xff] %vm47_vm0, %v145_v18 }
 0x110   :  { %146 = vst.msk [vmem:[#allocation2] sm:$0xff] %vm47_vm0, %v144_v20 }
 0x116   :  { %v152_v22 = vld [vmem:[#allocation2 + $0x8] sm:$0xff] }
 0x117   :  { %v151_v23 = vld [vmem:[#allocation2] sm:$0xff]  ;;  %v161_v24 = vadd.f32 %v184_v21, %v152_v22 }
 0x118   :  { %v160_v25 = vadd.f32 %v184_v21, %v151_v23 }
 0x119   :  { %163 = vst.msk [vmem:[#allocation8 + $0x8] sm:$0xff] %vm47_vm0, %v161_v24 }
 0x11a   :  { %162 = vst.msk [vmem:[#allocation8] sm:$0xff] %vm47_vm0, %v160_v25 }
 0x11b   :  { %291 = shalt.err (!%p288_p6)
}
 0x11c   :  { %s292_s15 = scalar_lea.hbm %s393_s3, 256 }
 0x11d   :  { %p293_p7 = scmp.ne.s32.totalorder %s393_s3, %s292_s15  ;;  %p296_p8 = scmp.lt.u32.totalorder %s292_s15, %s393_s3 }
 0x11f   :  { %p298_p9 = pnand %p296_p8, %p293_p7 }
 0x121   :  { %301 = shalt.err (!%p298_p9)
}
 0x122   :  { %175 = dma.vmem_to_hbm [thread:$0]  %s170_s12, 256, %s393_s3, [#allocation5], %s309_s22, %s309_s22, %s310_s23  }
 0x123   :  { %306 = dma.done.wait [#allocation5], 256  }
 0x124   :  { %307 = vsyncadd [#allocation5], 4294967040 }
 0x125   :  { %179 = vsyncpa [#allocation4], 1 }
 0x126   :  { %180 = vsyncpa [#allocation7], 1 }
 0x127   :  { %181 = vsyncpa [#allocation5], 1 }

</bundles_post_ra>
